<compile_context>
chip_gen: v6e
topology: v6e:2x2x1
jax: 0.10.0
libtpu: 0.0.40
codegen_flags: <defaults>
</compile_context>

<pallas_src>
import functools

import jax
import jax.numpy as jnp
from jax import lax
from jax.experimental import pallas as pl
from jax.experimental.pallas import tpu as pltpu

_LANE = 128
_MAX_TILE_KEYPOINTS = 524288  # 512K keypoints -> <= ~17 MiB double-buffered VMEM


def _keypoints_l2_loss_kernel(diff_ref, val_ref, out_ref, *, s_total):
    """One grid step: partial masked-L2-norm and validity sums over a tile.

    diff_ref : (D, s_blk, 128) f32  gt - pred, lane-dense
    val_ref  : (s_blk, 128)    f32  per-keypoint validity
    out_ref  : (1, 2, 128)     f32  row 0: per-lane norm partials
                                    row 1: per-lane validity partials
    """
    s_blk = val_ref.shape[0]

    d = diff_ref[...].astype(jnp.float32)           # (D, s_blk, 128)
    v = val_ref[...].astype(jnp.float32)            # (s_blk, 128)

    # Sum of squares over the tiny D axis: plain VPU adds of packed slabs.
    ssq = jnp.sum(d * d, axis=0)                    # (s_blk, 128)

    # Mask rows of the (possibly ragged) last tile that lie past the data.
    row = (pl.program_id(0) * s_blk
           + lax.broadcasted_iota(jnp.int32, (s_blk, _LANE), 0))
    ok = row < s_total
    v = jnp.where(ok, v, 0.0)
    # Mask before sqrt: out-of-range rows may hold garbage (NaN * 0 == NaN).
    ssq = jnp.where(ok, ssq * v, 0.0)
    norms = jnp.sqrt(ssq)                           # sqrt(0) == 0 for invalid

    # Reduce only over the sublane axis; lanes are combined in the epilogue.
    norm_lane = jnp.sum(norms, axis=0, keepdims=True)   # (1, 128)
    val_lane = jnp.sum(v, axis=0, keepdims=True)         # (1, 128)

    r = lax.broadcasted_iota(jnp.int32, (2, _LANE), 0)
    out_ref[...] = jnp.where(r == 0, norm_lane, val_lane).reshape(1, 2, _LANE)


@functools.partial(jax.jit, static_argnames=("tile_keypoints",))
def keypoints_l2_loss(keypoints_pred, keypoints_gt, keypoints_binary_validity,
                      *, tile_keypoints=262144):
    """pred/gt: (B, N, D); validity: (B, N, 1). Returns scalar f32 loss."""
    B, N, D = keypoints_pred.shape
    BN = B * N

    # diff in the wrapper (fused elementwise): kernel streams 16 B/keypoint
    # instead of 28, and only diff needs the minor-dim transpose.
    diff = (keypoints_gt.astype(jnp.float32)
            - keypoints_pred.astype(jnp.float32)).reshape(BN, D)
    val = keypoints_binary_validity.astype(jnp.float32).reshape(BN)

    # Pad at most 127 keypoints so the dense (D, S, 128) reshape is valid.
    # Padded entries (diff = 0, val = 0) contribute nothing to either sum.
    BN_pad = -(-BN // _LANE) * _LANE
    pad = BN_pad - BN
    if pad:
        diff = jnp.pad(diff, ((0, pad), (0, 0)))
        val = jnp.pad(val, ((0, pad),))

    S = BN_pad // _LANE
    diff3 = jnp.transpose(diff, (1, 0)).reshape(D, S, _LANE)  # lane-dense
    val2 = val.reshape(S, _LANE)

    # Tile over the S axis: multiple of 8 sublanes, big enough to amortize the
    # per-step overhead, small enough for VMEM on every TPU generation.
    tile_kp = max(_LANE, min(int(tile_keypoints), _MAX_TILE_KEYPOINTS))
    max_s_blk = max(8, (tile_kp // _LANE) // 8 * 8)
    s_blk = S if S <= max_s_blk else max_s_blk
    grid = -(-S // s_blk)

    kernel = functools.partial(_keypoints_l2_loss_kernel, s_total=S)

    cost = pl.CostEstimate(
        flops=8 * BN_pad,
        transcendentals=BN_pad,
        bytes_accessed=(D + 1) * 4 * BN_pad + grid * 2 * _LANE * 4,
    )

    parts = pl.pallas_call(
        kernel,
        out_shape=jax.ShapeDtypeStruct((grid, 2, _LANE), jnp.float32),
        grid=(grid,),
        in_specs=[
            pl.BlockSpec((D, s_blk, _LANE), lambda i: (0, i, 0)),
            pl.BlockSpec((s_blk, _LANE), lambda i: (i, 0)),
        ],
        out_specs=pl.BlockSpec((1, 2, _LANE), lambda i: (i, 0, 0)),
        compiler_params=pltpu.CompilerParams(
            dimension_semantics=("parallel",),      # independent per-tile partials
            vmem_limit_bytes=32 * 1024 * 1024,      # safe on v5e/v6e/v7x
        ),
        cost_estimate=cost,
    )(diff3, val2)

    # Tiny epilogue in JAX: combine partials, then max(1, .) and divide.
    total_norm = jnp.sum(parts[:, 0, :])
    total_val = jnp.sum(parts[:, 1, :])
    # TODO(synk): forward-only; sqrt(0) at invalid / zero-diff keypoints would
    # need an eps clamp or a custom VJP before this is differentiated.
    return total_norm / jnp.maximum(jnp.float32(1.0), total_val)


def _reference(pred, gt, val):
    # Pure-JAX reference mirroring the PyTorch forward.
    loss = jnp.sum(jnp.sqrt(jnp.sum((gt - pred) ** 2 * val, axis=2)))
    return loss / jnp.maximum(1.0, jnp.sum(val))


if __name__ == "__main__":
    key = jax.random.PRNGKey(0)
    k1, k2, k3 = jax.random.split(key, 3)

    B, N, D = 2, 8, 3  # batch, num keypoints, coordinate dim
    keypoints_pred = jax.random.normal(k1, (B, N, D), dtype=jnp.float32)
    keypoints_gt = jax.random.normal(k2, (B, N, D), dtype=jnp.float32)
    keypoints_binary_validity = (
        jax.random.uniform(k3, (B, N, 1)) > 0.3
    ).astype(jnp.float32)

    loss = keypoints_l2_loss(
        keypoints_pred, keypoints_gt, keypoints_binary_validity
    )
    loss = jax.block_until_ready(loss)

    ref = jax.block_until_ready(
        _reference(keypoints_pred, keypoints_gt, keypoints_binary_validity)
    )

    assert jnp.allclose(loss, ref, rtol=1e-5, atol=1e-5), (loss, ref)
    print("KERNEL_OK")
</pallas_src>

<mosaic_0001>
module attributes {stable_mosaic.version = 11 : i64} {
  func.func @_keypoints_l2_loss_kernel(%arg0: i32, %arg1: memref<3x1x128xf32, #tpu.memory_space<vmem>>, %arg2: memref<1x128xf32, #tpu.memory_space<vmem>>, %arg3: memref<1x2x128xf32, #tpu.memory_space<vmem>>) attributes {dimension_semantics = [#tpu.dimension_semantics<parallel>], iteration_bounds = array<i64: 1>, scalar_prefetch = 0 : i64, scratch_operands = 0 : i64, tpu.core_type = #tpu.core_type<tc>, window_params = [{transform_indices = @transform_0, window_bounds = array<i64: 3, 1, 128>}, {transform_indices = @transform_1, window_bounds = array<i64: 1, 128>}, {transform_indices = @transform_2, window_bounds = array<i64: 1, 2, 128>}]} {
    %c0 = arith.constant 0 : index
    %c0_0 = arith.constant 0 : index
    %c0_1 = arith.constant 0 : index
    %0 = vector.load %arg1[%c0, %c0_0, %c0_1] : memref<3x1x128xf32, #tpu.memory_space<vmem>>, vector<3x1x128xf32>
    %c0_2 = arith.constant 0 : index
    %c0_3 = arith.constant 0 : index
    %1 = vector.load %arg2[%c0_2, %c0_3] : memref<1x128xf32, #tpu.memory_space<vmem>>, vector<1x128xf32>
    %2 = arith.mulf %0, %0 : vector<3x1x128xf32>
    %cst = arith.constant dense<0.000000e+00> : vector<1x128xf32>
    %3 = vector.multi_reduction <add>, %2, %cst [0] : vector<3x1x128xf32> to vector<1x128xf32>
    %c1_i32 = arith.constant 1 : i32
    %4 = arith.muli %arg0, %c1_i32 : i32
    %5 = tpu.iota {dimensions = array<i32: 0>} : vector<1x128xi32>
    %6 = vector.broadcast %4 : i32 to vector<1x128xi32>
    %7 = arith.addi %6, %5 : vector<1x128xi32>
    %c1_i32_4 = arith.constant 1 : i32
    %8 = vector.broadcast %c1_i32_4 : i32 to vector<1x128xi32>
    %9 = arith.cmpi slt, %7, %8 : vector<1x128xi32>
    %cst_5 = arith.constant 0.000000e+00 : f32
    %10 = vector.broadcast %cst_5 : f32 to vector<1x128xf32>
    %11 = arith.select %9, %1, %10 : vector<1x128xi1>, vector<1x128xf32>
    %12 = arith.mulf %3, %11 : vector<1x128xf32>
    %cst_6 = arith.constant 0.000000e+00 : f32
    %13 = vector.broadcast %cst_6 : f32 to vector<1x128xf32>
    %14 = arith.select %9, %12, %13 : vector<1x128xi1>, vector<1x128xf32>
    %15 = math.sqrt %14 : vector<1x128xf32>
    %cst_7 = arith.constant dense<0.000000e+00> : vector<128xf32>
    %16 = vector.multi_reduction <add>, %15, %cst_7 [0] : vector<1x128xf32> to vector<128xf32>
    %17 = vector.shape_cast %16 : vector<128xf32> to vector<1x128xf32>
    %cst_8 = arith.constant dense<0.000000e+00> : vector<128xf32>
    %18 = vector.multi_reduction <add>, %11, %cst_8 [0] : vector<1x128xf32> to vector<128xf32>
    %19 = vector.shape_cast %18 : vector<128xf32> to vector<1x128xf32>
    %20 = tpu.iota {dimensions = array<i32: 0>} : vector<2x128xi32>
    %c0_i32 = arith.constant 0 : i32
    %21 = vector.broadcast %c0_i32 : i32 to vector<2x128xi32>
    %22 = arith.cmpi eq, %20, %21 : vector<2x128xi32>
    %23 = vector.shape_cast %17 : vector<1x128xf32> to vector<1x128xf32>
    %24 = vector.broadcast %23 : vector<1x128xf32> to vector<2x128xf32>
    %25 = vector.shape_cast %19 : vector<1x128xf32> to vector<1x128xf32>
    %26 = vector.broadcast %25 : vector<1x128xf32> to vector<2x128xf32>
    %27 = arith.select %22, %24, %26 : vector<2x128xi1>, vector<2x128xf32>
    %28 = vector.shape_cast %27 : vector<2x128xf32> to vector<1x2x128xf32>
    %c0_9 = arith.constant 0 : index
    %c0_10 = arith.constant 0 : index
    %c0_11 = arith.constant 0 : index
    %29 = vector.load %arg3[%c0_9, %c0_10, %c0_11] : memref<1x2x128xf32, #tpu.memory_space<vmem>>, vector<1x2x128xf32>
    tpu.vector_store %arg3[%c0_9, %c0_10, %c0_11], %28 {strides = array<i32>} : memref<1x2x128xf32, #tpu.memory_space<vmem>>, vector<1x2x128xf32>,
    return
  }
  func.func @transform_0(%arg0: i32) -> (i32, i32, i32) {
    %c0_i32 = arith.constant 0 : i32
    %c0_i32_0 = arith.constant 0 : i32
    %c0_i32_1 = arith.constant 0 : i32
    return %c0_i32, %arg0, %c0_i32_0 : i32, i32, i32
  }
  func.func @transform_1(%arg0: i32) -> (i32, i32) {
    %c0_i32 = arith.constant 0 : i32
    %c0_i32_0 = arith.constant 0 : i32
    return %arg0, %c0_i32 : i32, i32
  }
  func.func @transform_2(%arg0: i32) -> (i32, i32, i32) {
    %c0_i32 = arith.constant 0 : i32
    %c0_i32_0 = arith.constant 0 : i32
    %c0_i32_1 = arith.constant 0 : i32
    return %arg0, %c0_i32, %c0_i32_0 : i32, i32, i32
  }
}

</mosaic_0001>

<bundles_post_ra>
// kernel: sub.1
= control target key start
LH: loop header
LB: loop body
LE: loop exit
PB: predicated region body
PF: predicated region fallthrough
CT: control target
= control target key end

     0   :  { %3 = vsyncpa [#allocation1], 0  ;;  %s140_s0 = inlined_call_operand.hbm [shape: f32[2,8,3], index: 0, kind: input, shape index: {}]   ;;  %s141_s1 = inlined_call_operand.hbm [shape: f32[2,8,3], index: 1, kind: input, shape index: {}]   ;;  %s142_s2 = inlined_call_operand.vmem [shape: f32[2,8,3], index: 2, kind: output, shape index: {}]  }
   0x1   :  { %4 = vsyncpa [#allocation3], 0  ;;  %s106_s9 = smov [#allocation0]  }
   0x2   :  { %s8_s10 = sshll.u32 %s106_s9, 4  ;;  %s9_s10 = int_to_ptr.vmem [resolvable:$true] %s8_s10 }
   0x3   :  { %s70_s11 = scalar_lea.vmem %s9_s10, 96  ;;  %p75_p1 = scmp.lt.s32.totalorder %s9_s10, %s9_s10 }
   0x4   :  { %p71_p0 = scmp.ne.s32.totalorder %s9_s10, %s70_s11  ;;  %p76_p2 = scmp.lt.s32.totalorder %s70_s11, %s70_s11 }
   0x6   :  { %p77_p3 = por %p76_p2, %p75_p1 }
   0x8   :  { %p78_p4 = pnand %p77_p3, %p71_p0 }
   0xa   :  { %81 = shalt.err (!%p78_p4)
}
   0xb   :  { %s107_s12 = smov 32   ;;  %s108_s13 = smov 2  }
   0xc   :  { %14 = dma.hbm_to_vmem [thread:$0]  %s140_s0, 96, %s9_s10, [#allocation1], %s107_s12, %s107_s12, %s108_s13  }
   0xd   :  { %s109_s0 = smov [#allocation2]  }
   0xe   :  { %s18_s16 = sshll.u32 %s109_s0, 4  ;;  %s19_s16 = int_to_ptr.vmem [resolvable:$true] %s18_s16 }
   0xf   :  { %s90_s17 = scalar_lea.vmem %s19_s16, 96  ;;  %p95_p6 = scmp.lt.s32.totalorder %s19_s16, %s19_s16 }
  0x10   :  { %p91_p5 = scmp.ne.s32.totalorder %s19_s16, %s90_s17  ;;  %p96_p7 = scmp.lt.s32.totalorder %s90_s17, %s90_s17 }
  0x12   :  { %p97_p8 = por %p96_p7, %p95_p6 }
  0x14   :  { %p98_p9 = pnand %p97_p8, %p91_p5 }
  0x16   :  { %101 = shalt.err (!%p98_p9)
}
  0x17   :  { %24 = dma.hbm_to_vmem [thread:$0]  %s141_s1, 96, %s19_s16, [#allocation3], %s107_s12, %s107_s12, %s108_s13  }
  0x18   :  { %102 = dma.done.wait [#allocation1], 96  }
  0x19   :  { %103 = vsyncadd [#allocation1], 4294967200 }
  0x1a   :  { %104 = dma.done.wait [#allocation3], 96  }
  0x1b   :  { %105 = vsyncadd [#allocation3], 4294967200  ;;  %v27_v0 = vld [vmem:[#allocation0] sm:$0x3]  ;;  %v28_v1 = vld [vmem:[#allocation2] sm:$0x3] }
  0x1c   :  { %v35_v2 = vld [vmem:[#allocation0 + $0x2] sm:$0x3]  ;;  %v31_v3 = vsub.f32 %v27_v0, %v28_v1  ;;  %v37_v4 = vld [vmem:[#allocation2 + $0x2] sm:$0x3]  ;;  %v45_v5 = vld [vmem:[#allocation0 + $0x4] sm:$0x3] }
  0x1d   :  { %v47_v6 = vld [vmem:[#allocation2 + $0x4] sm:$0x3]  ;;  %v40_v7 = vsub.f32 %v35_v2, %v37_v4 }
  0x1e   :  { %v50_v8 = vsub.f32 %v45_v5, %v47_v6  ;;  %33 = vst [vmem:[%s142_s2] sm:$0x3] %v31_v3 }
  0x1f   :  { %56 = vst [vmem:[%s142_s2 + $0x2] sm:$0x3] %v40_v7 }
  0x20   :  { %57 = vst [vmem:[%s142_s2 + $0x4] sm:$0x3] %v50_v8 }
  0x21   :  { %54 = vsyncpa [#allocation1], 1 }
  0x22   :  { %55 = vsyncpa [#allocation3], 1 }

// kernel: keypoints_l2_loss.1
= control target key start
LH: loop header
LB: loop body
LE: loop exit
PB: predicated region body
PF: predicated region fallthrough
CT: control target
= control target key end

     0   :  { %vm18_vm0 = vcmask 1040384   ;;  %v24_v0 = vlaneseq  ;;  %s88_s0 = inlined_call_operand.vmem [shape: f32[3,1,128], index: 0, kind: input, shape index: {}]   ;;  %s89_s1 = inlined_call_operand.vmem [shape: f32[1,128], index: 1, kind: input, shape index: {}]   ;;  %s90_s2 = inlined_call_operand.vmem [shape: f32[1,2,128], index: 2, kind: output, shape index: {}]  }
   0x1   :  { %v11_v1 = vld [vmem:[%s88_s0] sm:$0x1]  ;;  %v12_v2 = vld [vmem:[%s88_s0 + $0x1] sm:$0x1]  ;;  %v13_v3 = vld [vmem:[%s88_s0 + $0x2] sm:$0x1] }
   0x2   :  { %v15_v4 = vmul.f32 %v11_v1, %v11_v1  ;;  %v16_v5 = vmul.f32 %v12_v2, %v12_v2  ;;  %v17_v6 = vmul.f32 %v13_v3, %v13_v3  ;;  %v25_v7 = vshrl.u32 %v24_v0, 7  ;;  %v14_v8 = vld [vmem:[%s89_s1] sm:$0x1] }
   0x4   :  { %v19_v9 = vsel %vm18_vm0, %v15_v4, 0.0  ;;  %v20_v10 = vsel %vm18_vm0, %v16_v5, 0.0  ;;  %v22_v11 = vsel %vm18_vm0, %v17_v6, 0.0  ;;  %vm28_vm1 = vcmp.lt.s32.totalorder %v25_v7, 1 }
   0x5   :  { %v21_v12 = vadd.f32 %v20_v10, %v19_v9  ;;  %v29_v13 = vsel %vm28_vm1, %v14_v8, 0.0  ;;  %v44_v17 = vsub.s32 0, %v25_v7  ;;  %vm41_vm4 = vcmp.eq.s32.totalorder %v25_v7, 0 }
   0x7   :  { %v23_v14 = vadd.f32 %v22_v11, %v21_v12  ;;  %v49_v22 = vrot.slane %v29_v13, %v44_v17 }
   0x9   :  { %v30_v15 = vmul.f32 %v29_v13, %v23_v14 }
   0xb   :  { %v31_v16 = vsel %vm28_vm1, %v30_v15, 0.0 }
   0xc   :  { %56 = vrsqrt.f32 %v31_v16  ;;  %vm34_vm2 = vcmp.eq.f32.partialorder %v31_v16, inf  ;;  %v37_v19 = vand.u32 2147483648, %v31_v16  ;;  %vm36_vm3 = vcmp.eq.f32.partialorder %v31_v16, 0.0 }
  0x19   :  { %v57_v18 = vpop.eup %56 }
  0x1a   :  { %v33_v20 = vmul.f32 %v57_v18, %v31_v16 }
  0x1c   :  { %v35_v21 = vsel %vm34_vm2, %v31_v16, %v33_v20 }
  0x1d   :  { %v38_v23 = vsel %vm36_vm3, %v37_v19, %v35_v21 }
  0x1e   :  { %v45_v24 = vrot.slane %v38_v23, %v44_v17 }
  0x20   :  { %v50_v25 = vsel %vm41_vm4, %v45_v24, %v49_v22 }
  0x21   :  { %51 = vst [vmem:[%s90_s2] sm:$0x3] %v50_v25 }

</bundles_post_ra>
